<compile_context>
chip_gen: v7x
topology: tpu7x:2x2x1
jax: 0.10.0
libtpu: 0.0.40
codegen_flags: <defaults>
</compile_context>

<pallas_src>
import jax
import jax.numpy as jnp
from jax.experimental import pallas as pl
from jax.experimental.pallas import tpu as pltpu


REG = 4  # number of box sides (ltrb)


# ----------------------------------------------------------------------------
# Pallas kernel
# ----------------------------------------------------------------------------
def make_dfl_kernel(c1):
    C = REG * c1

    def kernel(x_ref, w_ref, o_ref):
        f32 = jnp.float32
        xf = x_ref[0].astype(f32)            # (C, TA)   channels x anchors
        w = w_ref[...].astype(f32)           # (8, C)    packed num/den projection

        # Numerically-stable per-group softmax numerators: exp(x - max_group).
        # Each group is a static 16-sublane slice; max is a cheap XLU reduce.
        exps = []
        for g in range(REG):
            xg = xf[g * c1:(g + 1) * c1, :]                   # (c1, TA)
            m = jnp.max(xg, axis=0, keepdims=True)            # (1, TA)
            exps.append(jnp.exp(xg - m))                      # EUP
        p = jnp.concatenate(exps, axis=0)                     # (C, TA)

        # Single MXU matmul does both the arange-weighted sums and the softmax
        # normalizers for all 4 groups at once: (8, C) @ (C, TA) -> (8, TA).
        res = jnp.dot(w, p, preferred_element_type=f32)       # (8, TA)
        out = res[:REG, :] / res[REG:2 * REG, :]              # (4, TA)

        o_ref[0] = out.astype(o_ref.dtype)

    return kernel


# ----------------------------------------------------------------------------
# Wrapper
# ----------------------------------------------------------------------------
def dfl_pallas(x, c1=16, a_tile=None):
    """x: (B, 4*c1, A) float.  Returns (B, 4, A) float32."""
    B, C, A = x.shape
    assert C == REG * c1, (C, c1)
    if a_tile is None:
        a_tile = min(A, 512)
    assert a_tile % 128 == 0 and A % a_tile == 0, (A, a_tile)

    # Packed projection matrix (padded to 8 sublanes, single parameter input):
    # rows 0..3: arange(c1) placed block-diagonally (numerator = expected value)
    # rows 4..7: ones placed block-diagonally        (denominator = softmax sum)
    ar = jnp.arange(c1, dtype=jnp.float32)
    w = jnp.zeros((2 * REG, C), jnp.float32)
    for g in range(REG):
        w = w.at[g, g * c1:(g + 1) * c1].set(ar)
        w = w.at[REG + g, g * c1:(g + 1) * c1].set(1.0)

    kernel = make_dfl_kernel(c1)
    grid = (B, A // a_tile)

    return pl.pallas_call(
        kernel,
        out_shape=jax.ShapeDtypeStruct((B, REG, A), jnp.float32),
        grid_spec=pltpu.PrefetchScalarGridSpec(
            num_scalar_prefetch=0,
            grid=grid,
            in_specs=[
                pl.BlockSpec((1, C, a_tile), lambda b, a: (b, 0, a)),
                pl.BlockSpec((2 * REG, C), lambda b, a: (0, 0)),
            ],
            out_specs=pl.BlockSpec((1, REG, a_tile), lambda b, a: (b, 0, a)),
        ),
        compiler_params=pltpu.CompilerParams(
            dimension_semantics=("parallel", "parallel")),
    )(x.astype(jnp.float32), w)


# ----------------------------------------------------------------------------
# Pure-JAX reference (mirrors the PyTorch forward) for validation
# ----------------------------------------------------------------------------
def dfl_ref(x, c1=16):
    b, _, a = x.shape
    xr = x.reshape(b, REG, c1, a).transpose(0, 2, 1, 3)   # (b, c1, 4, a)
    p = jax.nn.softmax(xr, axis=1)
    w = jnp.arange(c1, dtype=jnp.float32)
    return jnp.einsum("c,bcfa->bfa", w, p)                # (b, 4, a)


# ----------------------------------------------------------------------------
if __name__ == "__main__":
    key = jax.random.PRNGKey(0)
    B, c1, A = 2, 16, 256                    # x: (B, 4*c1, A) = (2, 64, 256)

    x = 2.0 * jax.random.normal(key, (B, REG * c1, A), jnp.float32)

    y = dfl_pallas(x, c1=c1)
    y = jax.block_until_ready(y)

    y_ref = dfl_ref(x, c1=c1)
    assert y.shape == (B, REG, A), (y.shape, (B, REG, A))
    err = float(jnp.max(jnp.abs(y - y_ref)))
    assert err < 1e-3, f"max abs error vs reference: {err}"

    print("KERNEL_OK")
</pallas_src>

<mosaic_0001>
module attributes {stable_mosaic.version = 11 : i64} {
  func.func @kernel(%arg0: i32, %arg1: i32, %arg2: memref<1x64x256xf32, #tpu.memory_space<vmem>>, %arg3: memref<8x64xf32, #tpu.memory_space<vmem>>, %arg4: memref<1x4x256xf32, #tpu.memory_space<vmem>>) attributes {dimension_semantics = [#tpu.dimension_semantics<parallel>, #tpu.dimension_semantics<parallel>], iteration_bounds = array<i64: 2, 1>, scalar_prefetch = 0 : i64, scratch_operands = 0 : i64, tpu.core_type = #tpu.core_type<tc>, window_params = [{transform_indices = @transform_0, window_bounds = array<i64: 1, 64, 256>}, {pipeline_mode = #tpu.pipeline_mode<synchronous>, transform_indices = @transform_1, window_bounds = array<i64: 8, 64>}, {transform_indices = @transform_2, window_bounds = array<i64: 1, 4, 256>}]} {
    %c0 = arith.constant 0 : index
    %c0_0 = arith.constant 0 : index
    %c0_1 = arith.constant 0 : index
    %0 = vector.load %arg2[%c0, %c0_0, %c0_1] : memref<1x64x256xf32, #tpu.memory_space<vmem>>, vector<1x64x256xf32>
    %1 = vector.shape_cast %0 : vector<1x64x256xf32> to vector<64x256xf32>
    %c0_2 = arith.constant 0 : index
    %c0_3 = arith.constant 0 : index
    %2 = vector.load %arg3[%c0_2, %c0_3] : memref<8x64xf32, #tpu.memory_space<vmem>>, vector<8x64xf32>
    %3 = vector.extract_strided_slice %1 {offsets = [0, 0], sizes = [16, 256], strides = [1, 1]} : vector<64x256xf32> to vector<16x256xf32>
    %cst = arith.constant dense<0xFF800000> : vector<256xf32>
    %4 = vector.multi_reduction <maximumf>, %3, %cst [0] : vector<16x256xf32> to vector<256xf32>
    %5 = vector.shape_cast %4 : vector<256xf32> to vector<1x256xf32>
    %6 = vector.broadcast %5 : vector<1x256xf32> to vector<16x256xf32>
    %7 = arith.subf %3, %6 : vector<16x256xf32>
    %8 = math.exp %7 : vector<16x256xf32>
    %9 = vector.extract_strided_slice %1 {offsets = [16, 0], sizes = [16, 256], strides = [1, 1]} : vector<64x256xf32> to vector<16x256xf32>
    %cst_4 = arith.constant dense<0xFF800000> : vector<256xf32>
    %10 = vector.multi_reduction <maximumf>, %9, %cst_4 [0] : vector<16x256xf32> to vector<256xf32>
    %11 = vector.shape_cast %10 : vector<256xf32> to vector<1x256xf32>
    %12 = vector.broadcast %11 : vector<1x256xf32> to vector<16x256xf32>
    %13 = arith.subf %9, %12 : vector<16x256xf32>
    %14 = math.exp %13 : vector<16x256xf32>
    %15 = vector.extract_strided_slice %1 {offsets = [32, 0], sizes = [16, 256], strides = [1, 1]} : vector<64x256xf32> to vector<16x256xf32>
    %cst_5 = arith.constant dense<0xFF800000> : vector<256xf32>
    %16 = vector.multi_reduction <maximumf>, %15, %cst_5 [0] : vector<16x256xf32> to vector<256xf32>
    %17 = vector.shape_cast %16 : vector<256xf32> to vector<1x256xf32>
    %18 = vector.broadcast %17 : vector<1x256xf32> to vector<16x256xf32>
    %19 = arith.subf %15, %18 : vector<16x256xf32>
    %20 = math.exp %19 : vector<16x256xf32>
    %21 = vector.extract_strided_slice %1 {offsets = [48, 0], sizes = [16, 256], strides = [1, 1]} : vector<64x256xf32> to vector<16x256xf32>
    %cst_6 = arith.constant dense<0xFF800000> : vector<256xf32>
    %22 = vector.multi_reduction <maximumf>, %21, %cst_6 [0] : vector<16x256xf32> to vector<256xf32>
    %23 = vector.shape_cast %22 : vector<256xf32> to vector<1x256xf32>
    %24 = vector.broadcast %23 : vector<1x256xf32> to vector<16x256xf32>
    %25 = arith.subf %21, %24 : vector<16x256xf32>
    %26 = math.exp %25 : vector<16x256xf32>
    %27 = tpu.concatenate %8, %14, %20, %26 in 0 : vector<16x256xf32>, vector<16x256xf32>, vector<16x256xf32>, vector<16x256xf32> -> vector<64x256xf32>
    %cst_7 = arith.constant dense<0.000000e+00> : vector<8x256xf32>
    %28 = tpu.matmul %2, %27, %cst_7 {dimension_numbers = #tpu.dot_dimension_numbers<[1], [0], [0], [1], [0, 0, 1, 1], [], []>} : vector<8x64xf32>, vector<64x256xf32>, vector<8x256xf32> -> vector<8x256xf32>
    %29 = vector.extract_strided_slice %28 {offsets = [0, 0], sizes = [4, 256], strides = [1, 1]} : vector<8x256xf32> to vector<4x256xf32>
    %30 = vector.extract_strided_slice %28 {offsets = [4, 0], sizes = [4, 256], strides = [1, 1]} : vector<8x256xf32> to vector<4x256xf32>
    %31 = arith.divf %29, %30 : vector<4x256xf32>
    %c0_8 = arith.constant 0 : index
    %c0_9 = arith.constant 0 : index
    %c0_10 = arith.constant 0 : index
    %32 = vector.load %arg4[%c0_8, %c0_9, %c0_10] : memref<1x4x256xf32, #tpu.memory_space<vmem>>, vector<1x4x256xf32>
    %33 = vector.shape_cast %32 : vector<1x4x256xf32> to vector<4x256xf32>
    %34 = vector.shape_cast %31 : vector<4x256xf32> to vector<1x4x256xf32>
    tpu.vector_store %arg4[%c0_8, %c0_9, %c0_10], %34 {strides = array<i32>} : memref<1x4x256xf32, #tpu.memory_space<vmem>>, vector<1x4x256xf32>,
    return
  }
  func.func @transform_0(%arg0: i32, %arg1: i32) -> (i32, i32, i32) {
    %c0_i32 = arith.constant 0 : i32
    %c0_i32_0 = arith.constant 0 : i32
    return %arg0, %c0_i32, %arg1 : i32, i32, i32
  }
  func.func @transform_1(%arg0: i32, %arg1: i32) -> (i32, i32) {
    %c0_i32 = arith.constant 0 : i32
    %c0_i32_0 = arith.constant 0 : i32
    %c0_i32_1 = arith.constant 0 : i32
    return %c0_i32, %c0_i32_0 : i32, i32
  }
  func.func @transform_2(%arg0: i32, %arg1: i32) -> (i32, i32, i32) {
    %c0_i32 = arith.constant 0 : i32
    %c0_i32_0 = arith.constant 0 : i32
    return %arg0, %c0_i32, %arg1 : i32, i32, i32
  }
}

</mosaic_0001>

<bundles_post_ra>
// kernel: tpu_custom_call.1
= control target key start
LH: loop header
LB: loop body
LE: loop exit
PB: predicated region body
PF: predicated region fallthrough
CT: control target
= control target key end

     0   :  { %7 = vsyncpa [#allocation3], 0  ;;  %s1134_s0 = inlined_call_operand.hbm [shape: f32[2,64,256], index: 0, kind: input, shape index: {}]   ;;  %s1135_s1 = inlined_call_operand.hbm [shape: f32[8,64], index: 1, kind: input, shape index: {}]   ;;  %s1136_s2 = inlined_call_operand.hbm [shape: f32[2,4,256], index: 2, kind: output, shape index: {}]  }
   0x1   :  { %9 = vsyncpa [#allocation3 + $0x1], 0 }
   0x2   :  { %10 = vsyncpa [#allocation6], 0 }
   0x3   :  { %11 = vsyncpa [#allocation4], 0 }
   0x4   :  { %13 = vsyncpa [#allocation4 + $0x1], 0  ;;  %s832_s9 = smov 0   ;;  %s834_s10 = smov 0  }
   0x5   :  { %s836_s11 = smov 0   ;;  %s838_s12 = smov 0  }
   0x6   :  { %s840_s13 = smov 0   ;;  %s842_s14 = smov 0  }
   0x7 LB: > { %s517_s15 = sadd.s32 4294967295, %s809_s14   ;;  %s518_s16 = sadd.s32 4294967294, %s809_s14   ;;  %s809_s14 = sphi %s842_s14, %s19_s14   ;;  %s805_s13 = sphi %s840_s13, %s1164_s13   ;;  %s801_s12 = sphi %s838_s12, %s1163_s12   ;;  %s797_s11 = sphi %s836_s11, %s1162_s11   ;;  %s793_s10 = sphi %s834_s10, %s1161_s10   ;;  %s789_s9 = sphi %s832_s9, %s1160_s9  }
   0x8   : > { %s40_s17 = sadd.s32 1, %s797_s11  ;;  %p47_p0 = scmp.ne.s32.totalorder %s797_s11, %s793_s10 }
   0x9   : > { %p48_p1 = scmp.eq.s32.totalorder %s809_s14, 0  ;;  %p53_p2 = scmp.ne.s32.totalorder %s793_s10, %s789_s9 }
   0xa   : > { %p870_p3 = scmp.eq.s32.totalorder %s517_s15, 0  ;;  %p100_p4 = scmp.eq.s32.totalorder %s517_s15, 1 }
   0xb   : > { %p874_p5 = por %p48_p1, %p47_p0  ;;  %p106_p6 = scmp.eq.s32.totalorder %s518_s16, 1 }
   0xc   : > { %s1143_s18 = scalar_select %p870_p3, 1, 0 }
   0xd   : > { %p880_p7 = por %p870_p3, %p53_p2  ;;  %p884_p8 = por %p100_p4, %p47_p0 }
   0xe   : > { %p888_p9 = por %p106_p6, %p53_p2  ;;  %p519_p10 = scmp.ge.s32.totalorder %s809_s14, 1 }
   0xf   : > { %s1145_s20 = scalar_select %p880_p7, 1, 0 }
  0x10   : > { %s1146_s21 = scalar_select %p884_p8, 1, 0 }
  0x11   : > { %s1147_s22 = scalar_select %p888_p9, 1, 0 }
  0x12   : > { %p113_p11 = scmp.lt.s32.totalorder %s809_s14, 3  ;;  %s811_s24 = smov [#allocation5]  }
  0x13   : > { %s126_s25 = sshll.u32 %s811_s24, 4  ;;  %p574_p1 = scmp.lt.s32.totalorder %s809_s14, 2  ;;  %s127_s25 = int_to_ptr.vmem [resolvable:$true] %s126_s25 }
  0x14   : > { %p895_p13 = pnand %p519_p10, %p113_p11  ;;  %s31_s28 = sadd.s32 1, %s805_s13 }
  0x15   : > { %p904_p4 = pnand %p574_p1, %p874_p5  ;;  %p915_p6 = scmp.ge.s32.totalorder %s31_s28, 2 }
  0x16   : > { %s1148_s23 = scalar_select %p895_p13, 1, 0 }
  0x17   : > { %p561_p0 = pneg %p895_p13  ;;  %s137_s30 = sand.u32 1, %s797_s11  }
  0x18   : > { %s1149_s26 = scalar_select %p904_p4, 1, 0 }
  0x19   : > { %p910_p2 = pnand %p561_p0, %p870_p3  ;;  %s665_s5 = scalar_lea.hbm %s1135_s1, 128 }
  0x1a   : > { %s1151_s29 = scalar_select %p915_p6, 1, 0 }
  0x1b   : > { %p666_p5 = scmp.ne.s32.totalorder %s1135_s1, %s665_s5  ;;  %p667_p10 = pneg %p910_p2 }
  0x1c   : > { %p672_p0 = scmp.lt.u32.totalorder %s665_s5, %s1135_s1 }
  0x1d   : > { %p668_p11 = pnand %p667_p10, %p666_p5 }
  0x1f   : > { %p669_p1 = pneg %p668_p11 }
  0x21   : > { %p674_p12 = pnand %p672_p0, %p669_p1 }
  0x23   : > { %677 = shalt.err (!%p674_p12)
}
  0x24   : > { %s678_s16 = scalar_lea.vmem %s127_s25, 128  ;;  %p686_p7 = scmp.lt.s32.totalorder %s127_s25, %s127_s25 }
  0x25   : > { %p679_p9 = scmp.ne.s32.totalorder %s127_s25, %s678_s16  ;;  %p687_p13 = scmp.lt.s32.totalorder %s678_s16, %s678_s16 }
  0x27   : > { %p681_p8 = pnand %p679_p9, %p667_p10  ;;  %p688_p4 = por %p687_p13, %p686_p7 }
  0x29   : > { %p682_p3 = pneg %p681_p8 }
  0x2b   : > { %p689_p6 = pnand %p688_p4, %p682_p3 }
  0x2d   : > { %692 = shalt.err (!%p689_p6)
}
  0x2e   : > { %564 = dma.hbm_to_vmem [thread:$0]  (!%p910_p2), %s1135_s1, 128, %s127_s25, [#allocation6]  }
  0x2f   : > { %p1152_p9 = scmp.ne.s32.totalorder %s1151_s29, 0  ;;  %s522_s3 = sshll.u32 %s137_s30, 7 }
  0x30   : > { %s535_s5 = sshll.u32 %s805_s13, 11  ;;  %s141_s8 = scalar_lea.vmem [#allocation2], %s522_s3 }
  0x31   : > { %s1166_s28 = smov (%p1152_p9, %s31_s28), 0  ;;  %s946_s7 = scalar_lea.hbm %s1134_s0, %s535_s5 }
  0x32   : > { %s35_s4 = ssub.s32 %s805_s13, %s1166_s28  ;;  %s150_s15 = sshll.u32 %s141_s8, 4  ;;  %s953_s15 = int_to_ptr.vmem [resolvable:$true] %s150_s15 }
  0x33   : > { %p38_p3 = scmp.eq.s32.totalorder %s35_s4, 0  ;;  %s955_s29 = scalar_lea.sflag [#allocation3], %s137_s30 }
  0x34   : > { %s693_s16 = scalar_lea.hbm %s946_s7, 2048  ;;  %p1153_p8 = scmp.ne.s32.totalorder %s1149_s26, 0 }
  0x35   : > { %s951_s25 = scalar_select %p38_p3, %s797_s11, %s40_s17  }
  0x36   : > { %p694_p7 = scmp.ne.s32.totalorder %s946_s7, %s693_s16  ;;  %p695_p12 = pneg %p1153_p8 }
  0x37   : > { %s698_s3 = scalar_lea.hbm %s1134_s0, 4096  ;;  %p699_p2 = scmp.lt.u32.totalorder %s946_s7, %s1134_s0 }
  0x38   : > { %p696_p13 = pnand %p695_p12, %p694_p7  ;;  %p700_p6 = scmp.lt.u32.totalorder %s698_s3, %s693_s16 }
  0x39   : > { %p702_p10 = scmp.lt.u32.totalorder %s693_s16, %s946_s7 }
  0x3a   : > { %p697_p4 = pneg %p696_p13  ;;  %p701_p5 = por %p700_p6, %p699_p2 }
  0x3c   : > { %p703_p11 = por %p702_p10, %p701_p5 }
  0x3e   : > { %p704_p1 = pnand %p703_p11, %p697_p4 }
  0x40   : > { %707 = shalt.err (!%p704_p1)
}
  0x41   : > { %s708_s17 = scalar_lea.vmem %s953_s15, 2048  ;;  %s812_s30 = smov [#allocation2]  }
  0x42   : > { %p709_p0 = scmp.ne.s32.totalorder %s953_s15, %s708_s17  ;;  %s713_s27 = sshll.u32 %s812_s30, 4  ;;  %s714_s27 = int_to_ptr.vmem [resolvable:$false] %s713_s27 }
  0x43   : > { %s715_s6 = scalar_lea.vmem %s714_s27, 4096  ;;  %p716_p7 = scmp.lt.s32.totalorder %s953_s15, %s714_s27 }
  0x44   : > { %p711_p9 = pnand %p709_p0, %p695_p12  ;;  %p717_p13 = scmp.lt.s32.totalorder %s715_s6, %s708_s17 }
  0x46   : > { %p712_p3 = pneg %p711_p9  ;;  %p718_p2 = por %p717_p13, %p716_p7 }
  0x48   : > { %p719_p6 = pnand %p718_p2, %p712_p3 }
  0x4a   : > { %722 = shalt.err (!%p719_p6)
}
  0x4b   : > { %s813_s8 = smov 256   ;;  %s814_s16 = smov 16  }
  0x4c   : > { %568 = dma.hbm_to_vmem [thread:$0]  (!%p1153_p8), %s946_s7, 2048, %s953_s15, %s955_s29, %s813_s8, %s813_s8, %s814_s16  }
  0x4d   : > { %p1154_p12 = scmp.ne.s32.totalorder %s1148_s23, 0 }
  0x4e   : > { %s986_s19 = sand.u32 (!%p1154_p12), 1, %s793_s10   ;;  %p1155_p4 = scmp.ne.s32.totalorder (!%p1154_p12), %s1145_s20, 0 }
  0x4f   : > { %162 = sbr.rel (%p1154_p12) target bundleno = 384 (0x180), region = 28  ;;  %s526_s24 = sshll.u32 (!%p1154_p12), %s986_s19, 7 }
  0x50   : > { %s165_s3 = scalar_lea.sflag (!%p1154_p12), [#allocation3], %s986_s19  ;;  %s990_s4 = scalar_lea.vmem (!%p1154_p12), [#allocation2], %s526_s24 }
  0x56   : > { %776 = dma.done.wait (%p1155_p4), %s165_s3, 2048  }
  0x57   : > { %778 = vsyncadd (%p1155_p4), %s165_s3, 4294965248  ;;  %p1156_p8 = scmp.ne.s32.totalorder %s1143_s18, 0 }
  0x59   : > { %780 = dma.done.wait (%p1156_p8), [#allocation6], 128  }
  0x5a   : > { %782 = vsyncadd (%p1156_p8), [#allocation6], 4294967168  ;;  %v815_v0 = vmov 0.0   ;;  %v1001_v1 = vld [vmem:[%s990_s4 + $0x8] sm:$0xff]  ;;  %v1004_v2 = vld [vmem:[%s990_s4 + $0x18] sm:$0xff]  ;;  %vm316_vm0 = vcmask 523264  }
  0x5b   : > { %384 = vmatprep.mubr.f32.mxu0 %v815_v0  ;;  %v1007_v3 = vld [vmem:[%s990_s4] sm:$0xff]  ;;  %v219_v4 = vmax.f32 %v1001_v1, %v1004_v2  ;;  %v1012_v5 = vld [vmem:[%s990_s4 + $0x10] sm:$0xff]  ;;  %v1015_v6 = vld [vmem:[%s990_s4 + $0x28] sm:$0xff]  ;;  %s528_s18 = sshll.u32 %s986_s19, 3  ;;  %s536_s20 = sshll.u32 %s801_s12, 7 }
  0x5c   : > { %v1018_v7 = vld [vmem:[%s990_s4 + $0x38] sm:$0xff]  ;;  %v212_v8 = vmax.f32 %v1007_v3, %v1012_v5  ;;  %v1025_v10 = vld [vmem:[%s990_s4 + $0x20] sm:$0xff]  ;;  %v1028_v11 = vld [vmem:[%s990_s4 + $0x30] sm:$0xff]  ;;  %s192_s23 = scalar_lea.vmem [#allocation7], %s528_s18  ;;  %s1085_s29 = scalar_lea.hbm %s1136_s2, %s536_s20 }
  0x5d   : > { %v245_v9 = vmax.f32 %v1015_v6, %v1018_v7  ;;  %v1031_v12 = vld [vmem:[%s990_s4 + $0x48] sm:$0xff]  ;;  %v220_v13 = vrot.slane %v219_v4, 4  ;;  %v238_v14 = vmax.f32 %v1025_v10, %v1028_v11  ;;  %v1036_v15 = vld [vmem:[%s990_s4 + $0x58] sm:$0xff]  ;;  %v1039_v16 = vld [vmem:[%s990_s4 + $0x40] sm:$0xff]  ;;  %s423_s26 = sshll.u32 %s192_s23, 4  ;;  %s407_s5 = scalar_lea.sflag [#allocation4], %s986_s19  ;;  %s1087_s26 = int_to_ptr.vmem [resolvable:$true] %s423_s26 }
  0x5e   : > { %v1042_v17 = vld [vmem:[%s990_s4 + $0x50] sm:$0xff]  ;;  %v213_v18 = vrot.slane %v212_v8, 4  ;;  %v271_v20 = vmax.f32 %v1031_v12, %v1036_v15  ;;  %v1049_v22 = vld [vmem:[%s990_s4 + $0x68] sm:$0xff]  ;;  %v1052_v23 = vld [vmem:[%s990_s4 + $0x78] sm:$0xff]  ;;  %s723_s17 = scalar_lea.vmem %s1087_s26, 128  ;;  %p1157_p10 = scmp.ne.s32.totalorder %s1146_s21, 0 }
  0x5f   : > { %v246_v19 = vrot.slane %v245_v9, 4  ;;  %v264_v21 = vmax.f32 %v1039_v16, %v1042_v17  ;;  %v1055_v24 = vld [vmem:[%s990_s4 + $0x60] sm:$0xff]  ;;  %v221_v25 = vmax.f32 %v219_v4, %v220_v13  ;;  %v239_v26 = vrot.slane %v238_v14, 4  ;;  %v1060_v28 = vld [vmem:[%s990_s4 + $0x70] sm:$0xff]  ;;  %p724_p5 = scmp.ne.s32.totalorder %s1087_s26, %s723_s17  ;;  %s816_s12 = smov [#allocation7]  }
  0x60   : > { %v297_v27 = vmax.f32 %v1049_v22, %v1052_v23  ;;  %v214_v29 = vmax.f32 %v212_v8, %v213_v18  ;;  %v272_v31 = vrot.slane %v271_v20, 4  ;;  %v290_v36 = vmax.f32 %v1055_v24, %v1060_v28  ;;  %s727_s30 = sshll.u32 %s816_s12, 4  ;;  %s728_s30 = int_to_ptr.vmem [resolvable:$false] %s727_s30 }
  0x61   : > { %v247_v30 = vmax.f32 %v245_v9, %v246_v19  ;;  %v265_v32 = vrot.slane %v264_v21, 4  ;;  %v222_v33 = vrot.slane %v221_v25, 2  ;;  %v240_v34 = vmax.f32 %v238_v14, %v239_v26  ;;  %p725_p11 = pnand %p724_p5, %p1157_p10  ;;  %s729_s27 = scalar_lea.vmem %s728_s30, 256 }
  0x62   : > { %v298_v35 = vrot.slane %v297_v27, 4  ;;  %v215_v37 = vrot.slane %v214_v29, 2  ;;  %v273_v39 = vmax.f32 %v271_v20, %v272_v31  ;;  %v291_v44 = vrot.slane %v290_v36, 4  ;;  %p730_p0 = scmp.lt.s32.totalorder %s1087_s26, %s728_s30  ;;  %p731_p9 = scmp.lt.s32.totalorder %s729_s27, %s723_s17 }
  0x63   : > { %v248_v38 = vrot.slane %v247_v30, 2  ;;  %v266_v40 = vmax.f32 %v264_v21, %v265_v32  ;;  %v223_v41 = vmax.f32 %v221_v25, %v222_v33  ;;  %v241_v42 = vrot.slane %v240_v34, 2  ;;  %p726_p1 = pneg %p725_p11 }
  0x64   : > { %v299_v43 = vmax.f32 %v297_v27, %v298_v35  ;;  %v216_v45 = vmax.f32 %v214_v29, %v215_v37  ;;  %v274_v47 = vrot.slane %v273_v39, 2  ;;  %v292_v52 = vmax.f32 %v290_v36, %v291_v44  ;;  %p732_p3 = por %p731_p9, %p730_p0 }
  0x65   : > { %v249_v46 = vmax.f32 %v247_v30, %v248_v38  ;;  %v267_v48 = vrot.slane %v266_v40, 2  ;;  %v224_v49 = vrot.slane %v223_v41, 1  ;;  %v242_v50 = vmax.f32 %v240_v34, %v241_v42 }
  0x66   : > { %v300_v51 = vrot.slane %v299_v43, 2  ;;  %v217_v53 = vrot.slane %v216_v45, 1  ;;  %v275_v55 = vmax.f32 %v273_v39, %v274_v47  ;;  %v293_v63 = vrot.slane %v292_v52, 2  ;;  %p733_p7 = pnand %p732_p3, %p726_p1 }
  0x67   : > { %v250_v54 = vrot.slane %v249_v46, 1  ;;  %v268_v56 = vmax.f32 %v266_v40, %v267_v48  ;;  %v225_v57 = vmax.f32 %v223_v41, %v224_v49  ;;  %v243_v58 = vrot.slane %v242_v50, 1 }
  0x68   : > { %v301_v59 = vmax.f32 %v299_v43, %v300_v51  ;;  %v218_v60 = vmax.f32 %v216_v45, %v217_v53  ;;  %v276_v62 = vrot.slane %v275_v55, 1  ;;  %v294_v33 = vmax.f32 %v292_v52, %v293_v63 }
  0x69   : > { %v251_v61 = vmax.f32 %v249_v46, %v250_v54  ;;  %v227_v0 = vsub.f32 %v1001_v1, %v225_v57  ;;  %v229_v4 = vsub.f32 %v1004_v2, %v225_v57  ;;  %v244_v8 = vmax.f32 %v242_v50, %v243_v58 }
  0x6a   : > { %v269_v9 = vrot.slane %v268_v56, 1  ;;  %v226_v13 = vsub.f32 %v1007_v3, %v218_v60  ;;  %v228_v14 = vsub.f32 %v1012_v5, %v218_v60  ;;  %v302_v26 = vrot.slane %v301_v59, 1 }
  0x6b   : > { %v253_v18 = vsub.f32 %v1015_v6, %v251_v61  ;;  %v255_v19 = vsub.f32 %v1018_v7, %v251_v61  ;;  %v232_v20 = vmul.f32 1.442695, %v227_v0  ;;  %v236_v21 = vmul.f32 1.442695, %v229_v4  ;;  %v211_v4 = vld [vmem:[#allocation5] sm:$0xff] }
  0x6c   : > { %v252_v25 = vsub.f32 %v1025_v10, %v244_v8  ;;  %v230_v27 = vmul.f32 1.442695, %v226_v13  ;;  %v234_v29 = vmul.f32 1.442695, %v228_v14  ;;  %v254_v1 = vsub.f32 %v1028_v11, %v244_v8 }
  0x6d   : > { %v277_v2 = vmax.f32 %v275_v55, %v276_v62  ;;  %629 = vpow2.f32 %v232_v20  ;;  %v258_v30 = vmul.f32 1.442695, %v253_v18  ;;  %v262_v31 = vmul.f32 1.442695, %v255_v19 }
  0x6e   : > { %631 = vpow2.f32 %v236_v21  ;;  %v270_v6 = vmax.f32 %v268_v56, %v269_v9  ;;  %v256_v7 = vmul.f32 1.442695, %v252_v25  ;;  %v303_v32 = vmax.f32 %v301_v59, %v302_v26 }
  0x6f   : > { %v279_v3 = vsub.f32 %v1031_v12, %v277_v2  ;;  %v281_v5 = vsub.f32 %v1036_v15, %v277_v2  ;;  %633 = vpow2.f32 %v230_v27  ;;  %v260_v10 = vmul.f32 1.442695, %v254_v1 }
  0x70   : > { %635 = vpow2.f32 %v234_v29  ;;  %v278_v34 = vsub.f32 %v1039_v16, %v270_v6  ;;  %v280_v35 = vsub.f32 %v1042_v17, %v270_v6  ;;  %v305_v36 = vsub.f32 %v1049_v22, %v303_v32 }
  0x71   : > { %637 = vpow2.f32 %v258_v30  ;;  %v284_v11 = vmul.f32 1.442695, %v279_v3  ;;  %v288_v37 = vmul.f32 1.442695, %v281_v5  ;;  %v307_v12 = vsub.f32 %v1052_v23, %v303_v32 }
  0x72   : > { %639 = vpow2.f32 %v262_v31  ;;  %v295_v15 = vrot.slane %v294_v33, 1  ;;  %v282_v38 = vmul.f32 1.442695, %v278_v34  ;;  %v286_v39 = vmul.f32 1.442695, %v280_v35 }
  0x73   : > { %641 = vpow2.f32 %v256_v7  ;;  %v310_v41 = vmul.f32 1.442695, %v305_v36  ;;  %v314_v16 = vmul.f32 1.442695, %v307_v12 }
  0x74   : > { %643 = vpow2.f32 %v260_v10  ;;  %v296_v40 = vmax.f32 %v294_v33, %v295_v15 }
  0x75   : > { %645 = vpow2.f32 %v284_v11 }
  0x76   : > { %647 = vpow2.f32 %v288_v37  ;;  %v304_v42 = vsub.f32 %v1055_v24, %v296_v40  ;;  %v306_v17 = vsub.f32 %v1060_v28, %v296_v40 }
  0x77   : > { %v630_v43 = vpop.eup %629  ;;  %649 = vpow2.f32 %v282_v38 }
  0x78   : > { %v632_v22 = vpop.eup %631  ;;  %651 = vpow2.f32 %v286_v39  ;;  %v308_v44 = vmul.f32 1.442695, %v304_v42  ;;  %v312_v23 = vmul.f32 1.442695, %v306_v17 }
  0x79   : > { %v634_v45 = vpop.eup %633  ;;  %v537_v46 = vpack.c.bf16 %v632_v22, %v630_v43  ;;  %653 = vpow2.f32 %v310_v41 }
  0x7a   : > { %v636_v47 = vpop.eup %635  ;;  %655 = vpow2.f32 %v314_v16 }
  0x7b   : > { %v638_v48 = vpop.eup %637  ;;  %538 = vmatprep.subr.bf16.mxu0 %v537_v46  ;;  %v539_v49 = vpack.c.bf16 %v636_v47, %v634_v45  ;;  %657 = vpow2.f32 %v308_v44 }
  0x7c   : > { %v640_v50 = vpop.eup %639  ;;  %659 = vpow2.f32 %v312_v23 }
  0x7d   : > { %v642_v24 = vpop.eup %641  ;;  %540 = vmatpush1.bf16.msra.mxu0 %v539_v49  ;;  %v541_v28 = vpack.c.bf16 %v640_v50, %v638_v48 }
  0x7e   : > { %v644_v51 = vpop.eup %643 }
  0x7f   : > { %v646_v52 = vpop.eup %645  ;;  %542 = vmatprep.subr.bf16.mxu0 %v541_v28  ;;  %v543_v53 = vpack.c.bf16 %v644_v51, %v642_v24 }
  0x80   : > { %v648_v54 = vpop.eup %647 }
  0x81   : > { %v650_v55 = vpop.eup %649  ;;  %544 = vmatpush1.bf16.msra.mxu0 %v543_v53  ;;  %v545_v56 = vpack.c.bf16 %v648_v54, %v646_v52 }
  0x82   : > { %v652_v57 = vpop.eup %651 }
  0x83   : > { %v654_v58 = vpop.eup %653  ;;  %546 = vmatprep.subr.bf16.mxu0 %v545_v56  ;;  %v547_v59 = vpack.c.bf16 %v652_v57, %v650_v55 }
  0x84   : > { %v656_v60 = vpop.eup %655 }
  0x85   : > { %v658_v61 = vpop.eup %657  ;;  %548 = vmatpush1.bf16.msra.mxu0 %v547_v59  ;;  %v549_v62 = vpack.c.bf16 %v656_v60, %v654_v58 }
  0x86   : > { %v660_v63 = vpop.eup %659 }
  0x87   : > { %550 = vmatprep.subr.bf16.mxu0 %v549_v62  ;;  %v551_v0 = vpack.c.bf16 %v660_v63, %v658_v61 }
  0x89   : > { %552 = vmatpush1.bf16.msra.mxu0 %v551_v0 }
  0x8c   : > { %529 = vmatmul.mubr.msk.f32.vlgmr.msra.gmra.mrb[0].mxu0 %vm316_vm0, %v211_v4 }
 0x15f   : > { %v386_v8 = vpop.f32.mrb[0].mxu0 }
 0x160   : > { %v393_v9 = vrot.slane %v386_v8, 4  ;;  %v388_v13 = vpop.f32.mrb[1].mxu0 }
 0x161   : > { %v394_v14 = vrot.slane %v388_v13, 4 }
 0x162   : > { %661 = vrcp.f32 %v393_v9 }
 0x163   : > { %663 = vrcp.f32 %v394_v14 }
 0x16c   : > { %v662_v18 = vpop.eup %661 }
 0x16d   : > { %v664_v19 = vpop.eup %663  ;;  %v398_v20 = vmul.f32 %v662_v18, %v386_v8 }
 0x16e   : > { %v400_v21 = vmul.f32 %v664_v19, %v388_v13 }
 0x170   : > { %v403_v25 = vcombine.low %v398_v20, %v400_v21 }
 0x172   : > { %405 = vst [vmem:[%s192_s23] sm:$0xff] %v403_v25 }
 0x173   : > { %736 = shalt.err (!%p733_p7)
}
 0x174   : > { %s737_s6 = scalar_lea.hbm %s1085_s29, 128  ;;  %s741_s19 = scalar_lea.hbm %s1136_s2, 256 }
 0x175   : > { %p738_p13 = scmp.ne.s32.totalorder %s1085_s29, %s737_s6  ;;  %p742_p12 = scmp.lt.u32.totalorder %s1085_s29, %s1136_s2 }
 0x176   : > { %p743_p4 = scmp.lt.u32.totalorder %s741_s19, %s737_s6  ;;  %p745_p5 = scmp.lt.u32.totalorder %s737_s6, %s1085_s29 }
 0x177   : > { %p739_p2 = pnand %p738_p13, %p1157_p10 }
 0x178   : > { %p744_p8 = por %p743_p4, %p742_p12 }
 0x179   : > { %p740_p6 = pneg %p739_p2 }
 0x17a   : > { %p746_p11 = por %p745_p5, %p744_p8 }
 0x17c   : > { %p747_p1 = pnand %p746_p11, %p740_p6 }
 0x17e   : > { %750 = shalt.err (!%p747_p1)
}
 0x17f   : > { %559 = dma.vmem_to_hbm [thread:$0]  (%p1157_p10), %s1087_s26, 128, %s1085_s29, %s407_s5  }
 0x180 PF: > { %s435_s4 = sand.u32 1, %s789_s9   ;;  %p1158_p0 = scmp.ne.s32.totalorder %s1147_s22, 0 }
 0x181   : > { %p1159_p9 = scmp.ge.s32.totalorder %s809_s14, 2  ;;  %s436_s18 = scalar_lea.sflag [#allocation4], %s435_s4 }
 0x183   : > { %p570_p3 = pnand %p1159_p9, %p1158_p0 }
 0x185   : > { %784 = dma.done.wait (!%p570_p3), %s436_s18, 128  }
 0x186   : > { %786 = vsyncadd (!%p570_p3), %s436_s18, 4294967168  ;;  %s19_s14 = sadd.s32 1, %s809_s14   ;;  %s1160_s9 = smov %s793_s10 }
 0x187   : > { %p16_p7 = scmp.ge.s32.totalorder %s19_s14, 4   ;;  %s1161_s10 = smov %s797_s11 }
 0x188   : > { %s1162_s11 = smov %s951_s25  ;;  %s1163_s12 = smov %s805_s13 }
 0x189   : > { %s1164_s13 = smov %s1166_s28  ;;  %18 = sbr.rel (!%p16_p7) target bundleno = 7 (0x7), region = 77 }
 0x190   :  { %441 = vsyncpa [#allocation3], 1 }
 0x191   :  { %443 = vsyncpa [#allocation3 + $0x1], 1 }
 0x192   :  { %444 = vsyncpa [#allocation6], 1 }
 0x193   :  { %445 = vsyncpa [#allocation4], 1 }
 0x194   :  { %447 = vsyncpa [#allocation4 + $0x1], 1 }

</bundles_post_ra>
